<compile_context>
chip_gen: v5e
topology: v5e:2x2
jax: 0.10.0
libtpu: 0.0.40
codegen_flags: <defaults>
</compile_context>

<pallas_src>
import math

import numpy as np
import jax
import jax.numpy as jnp
from jax.experimental import pallas as pl
from jax.experimental.pallas import tpu as pltpu


def _sinusoidal_kernel(x_ref, fsel_ref, phase_ref, out_ref):
    # x_ref:     (T, g)  f32 timesteps (g packed timesteps per output row)
    # fsel_ref:  (g, W)  f32 block-diagonal rows of duplicated frequencies (resident)
    # phase_ref: (1, W)  f32, -pi/2 on "sin" lanes, 0 on "cos" lanes (resident)
    # out_ref:   (T, W)  output tile; W = g * dim (>= 128 when packed)
    g = fsel_ref.shape[0]
    xb = x_ref[...]
    fsel = fsel_ref[...]
    acc = xb[:, 0:1] * fsel[0:1, :]                     # (T, W) broadcast mul, VPU
    for j in range(1, g):                               # static unroll, g is small
        acc = acc + xb[:, j:j + 1] * fsel[j:j + 1, :]
    # Single fused transcendental: cos(z - pi/2) == sin(z).
    out_ref[...] = jnp.cos(acc + phase_ref[...]).astype(out_ref.dtype)


def _is_v7x():
    try:
        kind = jax.devices()[0].device_kind.lower()
    except Exception:
        return False
    return ("v7" in kind) or ("7x" in kind)


def sinusoidal_pos_emb(x, dim, *, out_dtype=jnp.float32):
    """x: (N,) float array of timesteps. Returns (N, dim) sinusoidal embedding."""
    assert dim % 2 == 0, "dim must be even"
    half_dim = dim // 2
    assert half_dim > 1, "half_dim must be > 1 (module divides by half_dim - 1)"

    sz = math.log(10000.0) / (half_dim - 1)
    freqs = jnp.exp(jnp.arange(half_dim, dtype=jnp.float32) * -sz)        # (half,)
    freq_dup = jnp.concatenate([freqs, freqs])                            # (dim,)
    phase_row = jnp.concatenate([
        jnp.full((half_dim,), -math.pi / 2.0, jnp.float32),               # sin lanes
        jnp.zeros((half_dim,), jnp.float32),                              # cos lanes
    ])

    xf = x.reshape(-1).astype(jnp.float32)
    n = xf.shape[0]
    assert n > 0

    # Lane-dense packing: g timesteps per 128-lane output row when dim < 128.
    # (For dim < 128 with 128 % dim != 0 we fall back to g=1 masked stores.)
    if dim < 128 and 128 % dim == 0:
        g = 128 // dim
    else:
        g = 1
    w = dim * g                                   # lane width of each output row

    pad = (-n) % g                                # tiny pad of x only (< g elements)
    if pad:
        xf = jnp.concatenate([xf, jnp.zeros((pad,), jnp.float32)])
    n_rows = (n + pad) // g
    x2 = xf.reshape(n_rows, g)

    if g == 1:
        fsel = freq_dup.reshape(1, w)
        phase = phase_row.reshape(1, w)
    else:
        eye = jnp.eye(g, dtype=jnp.float32)
        fsel = (eye[:, :, None] * freq_dup[None, None, :]).reshape(g, w)  # block-diag
        phase = jnp.tile(phase_row, g).reshape(1, w)

    # --- tile sizing: ~4 MiB of output per grid step, multiple of the sublane
    # packing for out_dtype; double-buffered this stays well under the 32 MiB
    # vmem limit we request (valid on v5e/v6e and within v7x's 64 MiB physical).
    out_itemsize = np.dtype(out_dtype).itemsize
    row_align = max(8, 32 // out_itemsize)        # 8 (f32), 16 (bf16), 32 (8-bit)
    target_tile_bytes = 4 * 1024 * 1024
    bytes_per_row = w * out_itemsize
    max_tile_rows = max(row_align,
                        (target_tile_bytes // bytes_per_row) // row_align * row_align)
    if n_rows <= max_tile_rows:
        tile_rows = n_rows                        # single full-extent block, no padding
    else:
        tile_rows = max_tile_rows                 # aligned tiles, ragged last block masked
    grid_n = pl.cdiv(n_rows, tile_rows)

    cost = pl.CostEstimate(
        flops=2 * g * n_rows * w,                             # mul-acc expansion + phase add
        transcendentals=n_rows * w,                           # exactly one cos per element
        bytes_accessed=n_rows * w * out_itemsize + n_rows * g * 4 + (g + 1) * w * 4,
    )

    def make_call(dim_sems):
        return pl.pallas_call(
            _sinusoidal_kernel,
            out_shape=jax.ShapeDtypeStruct((n_rows, w), out_dtype),
            grid=(grid_n,),
            in_specs=[
                pl.BlockSpec((tile_rows, g), lambda i: (i, 0)),
                pl.BlockSpec((g, w), lambda i: (0, 0)),       # resident, fetched once
                pl.BlockSpec((1, w), lambda i: (0, 0)),       # resident, fetched once
            ],
            out_specs=pl.BlockSpec((tile_rows, w), lambda i: (i, 0)),
            compiler_params=pltpu.CompilerParams(
                dimension_semantics=dim_sems,
                vmem_limit_bytes=32 * 1024 * 1024,
            ),
            cost_estimate=cost,
        )

    def finish(out):
        out = out.reshape(n_rows * g, dim)        # free: identical row-major buffer
        return out[:n] if (n_rows * g) != n else out

    if _is_v7x():
        try:
            # Actually split the N tiles across both v7x TensorCores.
            return finish(make_call((pltpu.CORE_PARALLEL,))(x2, fsel, phase))
        except Exception:
            pass                                   # fall back to single-core semantics
    return finish(make_call(("parallel",))(x2, fsel, phase))


def _reference(x, dim):
    half_dim = dim // 2
    sz = math.log(10000.0) / (half_dim - 1)
    freqs = jnp.exp(jnp.arange(half_dim, dtype=jnp.float32) * -sz)
    emb = x.astype(jnp.float32).reshape(-1, 1) * freqs.reshape(1, -1)
    return jnp.concatenate([jnp.sin(emb), jnp.cos(emb)], axis=-1)


if __name__ == "__main__":
    key = jax.random.PRNGKey(0)

    # Case 1: small dim -> lane-dense packed path (g = 128 // 32 = 4 timesteps/row).
    N, DIM = 8, 32
    x = jax.random.uniform(key, (N,), dtype=jnp.float32) * 1000.0
    out = jax.block_until_ready(sinusoidal_pos_emb(x, DIM))
    ref = _reference(x, DIM)
    assert out.shape == (N, DIM)
    # sin is computed as cos(z - pi/2); for |z| up to ~1e3 the phase add can round
    # by ~0.5 ulp(z) ~ 3e-5 in the argument, so allow a little headroom.
    assert jnp.allclose(out, ref, atol=2e-4, rtol=0.0), float(jnp.max(jnp.abs(out - ref)))

    # Case 2: dim >= 128, ragged N -> single full-width row path, no pad/slice copies.
    N2, DIM2 = 20, 256
    x2 = jax.random.uniform(jax.random.PRNGKey(1), (N2,), dtype=jnp.float32) * 1000.0
    out2 = jax.block_until_ready(sinusoidal_pos_emb(x2, DIM2))
    ref2 = _reference(x2, DIM2)
    assert out2.shape == (N2, DIM2)
    assert jnp.allclose(out2, ref2, atol=2e-4, rtol=0.0), float(jnp.max(jnp.abs(out2 - ref2)))

    print("KERNEL_OK")
</pallas_src>

<mosaic_0001>
module attributes {stable_mosaic.version = 11 : i64} {
  func.func @_sinusoidal_kernel(%arg0: i32, %arg1: memref<2x4xf32, #tpu.memory_space<vmem>>, %arg2: memref<4x128xf32, #tpu.memory_space<vmem>>, %arg3: memref<1x128xf32, #tpu.memory_space<vmem>>, %arg4: memref<2x128xf32, #tpu.memory_space<vmem>>) attributes {dimension_semantics = [#tpu.dimension_semantics<parallel>], iteration_bounds = array<i64: 1>, scalar_prefetch = 0 : i64, scratch_operands = 0 : i64, tpu.core_type = #tpu.core_type<tc>, window_params = [{transform_indices = @transform_0, window_bounds = array<i64: 2, 4>}, {pipeline_mode = #tpu.pipeline_mode<synchronous>, transform_indices = @transform_1, window_bounds = array<i64: 4, 128>}, {pipeline_mode = #tpu.pipeline_mode<synchronous>, transform_indices = @transform_2, window_bounds = array<i64: 1, 128>}, {transform_indices = @transform_3, window_bounds = array<i64: 2, 128>}]} {
    %c0 = arith.constant 0 : index
    %c0_0 = arith.constant 0 : index
    %0 = vector.load %arg1[%c0, %c0_0] : memref<2x4xf32, #tpu.memory_space<vmem>>, vector<2x4xf32>
    %c0_1 = arith.constant 0 : index
    %c0_2 = arith.constant 0 : index
    %1 = vector.load %arg2[%c0_1, %c0_2] : memref<4x128xf32, #tpu.memory_space<vmem>>, vector<4x128xf32>
    %2 = vector.extract_strided_slice %0 {offsets = [0, 0], sizes = [2, 1], strides = [1, 1]} : vector<2x4xf32> to vector<2x1xf32>
    %3 = vector.extract_strided_slice %1 {offsets = [0, 0], sizes = [1, 128], strides = [1, 1]} : vector<4x128xf32> to vector<1x128xf32>
    %4 = vector.broadcast %2 : vector<2x1xf32> to vector<2x128xf32>
    %5 = vector.broadcast %3 : vector<1x128xf32> to vector<2x128xf32>
    %6 = arith.mulf %4, %5 : vector<2x128xf32>
    %7 = vector.extract_strided_slice %0 {offsets = [0, 1], sizes = [2, 1], strides = [1, 1]} : vector<2x4xf32> to vector<2x1xf32>
    %8 = vector.extract_strided_slice %1 {offsets = [1, 0], sizes = [1, 128], strides = [1, 1]} : vector<4x128xf32> to vector<1x128xf32>
    %9 = vector.broadcast %7 : vector<2x1xf32> to vector<2x128xf32>
    %10 = vector.broadcast %8 : vector<1x128xf32> to vector<2x128xf32>
    %11 = arith.mulf %9, %10 : vector<2x128xf32>
    %12 = arith.addf %6, %11 : vector<2x128xf32>
    %13 = vector.extract_strided_slice %0 {offsets = [0, 2], sizes = [2, 1], strides = [1, 1]} : vector<2x4xf32> to vector<2x1xf32>
    %14 = vector.extract_strided_slice %1 {offsets = [2, 0], sizes = [1, 128], strides = [1, 1]} : vector<4x128xf32> to vector<1x128xf32>
    %15 = vector.broadcast %13 : vector<2x1xf32> to vector<2x128xf32>
    %16 = vector.broadcast %14 : vector<1x128xf32> to vector<2x128xf32>
    %17 = arith.mulf %15, %16 : vector<2x128xf32>
    %18 = arith.addf %12, %17 : vector<2x128xf32>
    %19 = vector.extract_strided_slice %0 {offsets = [0, 3], sizes = [2, 1], strides = [1, 1]} : vector<2x4xf32> to vector<2x1xf32>
    %20 = vector.extract_strided_slice %1 {offsets = [3, 0], sizes = [1, 128], strides = [1, 1]} : vector<4x128xf32> to vector<1x128xf32>
    %21 = vector.broadcast %19 : vector<2x1xf32> to vector<2x128xf32>
    %22 = vector.broadcast %20 : vector<1x128xf32> to vector<2x128xf32>
    %23 = arith.mulf %21, %22 : vector<2x128xf32>
    %24 = arith.addf %18, %23 : vector<2x128xf32>
    %c0_3 = arith.constant 0 : index
    %c0_4 = arith.constant 0 : index
    %25 = vector.load %arg3[%c0_3, %c0_4] : memref<1x128xf32, #tpu.memory_space<vmem>>, vector<1x128xf32>
    %26 = vector.broadcast %25 : vector<1x128xf32> to vector<2x128xf32>
    %27 = arith.addf %24, %26 : vector<2x128xf32>
    %28 = math.cos %27 : vector<2x128xf32>
    %c0_5 = arith.constant 0 : index
    %c0_6 = arith.constant 0 : index
    %29 = vector.load %arg4[%c0_5, %c0_6] : memref<2x128xf32, #tpu.memory_space<vmem>>, vector<2x128xf32>
    tpu.vector_store %arg4[%c0_5, %c0_6], %28 {strides = array<i32>} : memref<2x128xf32, #tpu.memory_space<vmem>>, vector<2x128xf32>,
    return
  }
  func.func @transform_0(%arg0: i32) -> (i32, i32) {
    %c0_i32 = arith.constant 0 : i32
    %c0_i32_0 = arith.constant 0 : i32
    return %arg0, %c0_i32 : i32, i32
  }
  func.func @transform_1(%arg0: i32) -> (i32, i32) {
    %c0_i32 = arith.constant 0 : i32
    %c0_i32_0 = arith.constant 0 : i32
    %c0_i32_1 = arith.constant 0 : i32
    return %c0_i32, %c0_i32_0 : i32, i32
  }
  func.func @transform_2(%arg0: i32) -> (i32, i32) {
    %c0_i32 = arith.constant 0 : i32
    %c0_i32_0 = arith.constant 0 : i32
    %c0_i32_1 = arith.constant 0 : i32
    return %c0_i32, %c0_i32_0 : i32, i32
  }
  func.func @transform_3(%arg0: i32) -> (i32, i32) {
    %c0_i32 = arith.constant 0 : i32
    %c0_i32_0 = arith.constant 0 : i32
    return %arg0, %c0_i32 : i32, i32
  }
}

</mosaic_0001>

<bundles_post_ra>
// kernel: tpu_custom_call.1
= control target key start
LH: loop header
LB: loop body
LE: loop exit
PB: predicated region body
PF: predicated region fallthrough
CT: control target
= control target key end

     0   :  { %8 = vsyncpa [#allocation3], 0  ;;  %s463_s0 = inlined_call_operand.hbm [shape: f32[2,4], index: 0, kind: input, shape index: {}]   ;;  %s464_s1 = inlined_call_operand.hbm [shape: f32[4,128], index: 1, kind: input, shape index: {}]   ;;  %s465_s2 = inlined_call_operand.vmem [shape: f32[1,128], index: 2, kind: input, shape index: {}]   ;;  %s466_s3 = inlined_call_operand.hbm [shape: f32[2,128], index: 3, kind: output, shape index: {}]  }
   0x1   :  { %9 = vsyncpa [#allocation6], 0 }
   0x2   :  { %10 = vsyncpa [#allocation4], 0  ;;  %s16_s14 = sshll.u32 %s463_s0, 4  ;;  %s351_s15 = smov [#allocation2]   ;;  %s17_s14 = int_to_ptr.hbm [resolvable:$true] %s16_s14 }
   0x3   :  { %s18_s16 = sshll.u32 %s351_s15, 4  ;;  %s27_s19 = sshll.u32 %s464_s1, 4  ;;  %s19_s16 = int_to_ptr.vmem [resolvable:$true] %s18_s16  ;;  %s28_s19 = int_to_ptr.hbm [resolvable:$true] %s27_s19 }
   0x4   :  { %21 = dma.hbm_to_vmem [thread:$0]  %s17_s14, 32, %s19_s16, [#allocation3]  }
   0x5   :  { %s352_s20 = smov [#allocation5]  }
   0x6   :  { %s29_s21 = sshll.u32 %s352_s20, 4  ;;  %s30_s21 = int_to_ptr.vmem [resolvable:$true] %s29_s21 }
   0x7   :  { %32 = dma.hbm_to_vmem [thread:$0]  %s28_s19, 64, %s30_s21, [#allocation6]  }
   0x8   :  { %345 = dma.done.wait [#allocation3], 32  }
   0x9   :  { %346 = vsyncadd [#allocation3], 4294967264 }
   0xa   :  { %347 = dma.done.wait [#allocation6], 64  }
   0xb   :  { %348 = vsyncadd [#allocation6], 4294967232  ;;  %v353_v0 = vmov 0   ;;  %v354_v1 = vmov 2   ;;  %v43_v2 = vld [vmem:[#allocation2] sm:$0x3] }
   0xc   :  { %267 = vset.pattern.permute.xlu0 %v353_v0  ;;  %269 = vset.pattern.permute.xlu1 %v354_v1  ;;  %v355_v3 = vmov 1   ;;  %v356_v4 = vmov 3   ;;  %v44_v7 = vld [vmem:[#allocation5] sm:$0xf]  ;;  %v272_v19 = vld [vmem:[%s465_s2] ss:$0 sm:$0xff] }
   0xd   :  { %47 = vperm.xlu0 %267, %v43_v2   ;;  %60 = vperm.xlu1 %269, %v43_v2   ;;  %v50_v8 = vperm.slane %v44_v7, 0  ;;  %v56_v9 = vperm.slane %v44_v7, 1  ;;  %v63_v10 = vperm.slane %v44_v7, 2  ;;  %v70_v11 = vperm.slane %v44_v7, 3  ;;  %s363_s2 = smov [#allocation7]   ;;  %s240_s25 = sshll.u32 %s466_s3, 4  ;;  %s241_s25 = int_to_ptr.hbm [resolvable:$true] %s240_s25 }
   0xe   :  { %v357_v34 = vmov 2102212464   ;;  %v358_v36 = vmov 920167782   ;;  %v359_v39 = vmov 1326507024  }
   0xf   :  { %v360_v41 = vmov 683565275   ;;  %v361_v43 = vmov 2475754826   ;;  %v362_v46 = vmov 2131351028  }
  0x10   :  { %s238_s22 = sshll.u32 %s363_s2, 4  ;;  %s239_s22 = int_to_ptr.vmem [resolvable:$true] %s238_s22 }
  0x15   :  { %268 = vset.pattern.permute.xlu0 %v355_v3  ;;  %270 = vset.pattern.permute.xlu1 %v356_v4 }
  0x16   :  { %53 = vperm.xlu0 %268, %v43_v2   ;;  %67 = vperm.xlu1 %270, %v43_v2  }
  0x1e   :  { %271 = vset.pattern.permute.xlu0 %v356_v4 }
  0x7f   :  { %v48_v5 = vpop.permute.xlu0 %47  ;;  %v61_v6 = vpop.permute.xlu1 %60 }
  0x80   :  { %v51_v14 = vmul.f32 %v50_v8, %v48_v5  ;;  %v64_v16 = vmul.f32 %v63_v10, %v61_v6 }
  0x88   :  { %v54_v12 = vpop.permute.xlu0 %53  ;;  %v68_v13 = vpop.permute.xlu1 %67 }
  0x89   :  { %v57_v15 = vmul.f32 %v56_v9, %v54_v12  ;;  %v71_v18 = vmul.f32 %v70_v11, %v68_v13 }
  0x8b   :  { %v58_v17 = vadd.f32 %v57_v15, %v51_v14 }
  0x8d   :  { %v65_v20 = vadd.f32 %v64_v16, %v58_v17 }
  0x8f   :  { %v72_v21 = vadd.f32 %v71_v18, %v65_v20 }
  0x91   :  { %v394_v22 = vadd.f32 %v272_v19, %v72_v21 }
  0x93   :  { %v81_v23 = vand.u32 2139095040, %v394_v22  ;;  %v78_v26 = vand.u32 2147483647, %v394_v22  ;;  %vm80_vm12 = vcmp.lt.s32.totalorder %v394_v22, 0 }
  0x95   :  { %v82_v24 = vshrl.u32 %v81_v23, 23  ;;  %v85_v28 = vand.u32 8388607, %v78_v26  ;;  %vm450_vm13 = vcmp.le.f32.partialorder %v78_v26, 0.7853982 }
  0x97   :  { %v251_v25 = vadd.s32 4294967169, %v82_v24  ;;  %v86_v32 = vor.u32 8388608, %v85_v28 }
  0x99   :  { %v88_v27 = vadd.s32 1, %v251_v25  ;;  %v409_v53 = vshll.u32 %v86_v32, 8 }
  0x9b   :  { %vm89_vm0 = vcmp.gt.s32.totalorder %v88_v27, 0  ;;  %v127_v63 = vand.u32 65535, %v409_v53  ;;  %v128_v2 = vshrl.u32 %v409_v53, 16 }
  0x9c   :  { %v90_v29 = vsel %vm89_vm0, %v88_v27, 0 }
  0x9d   :  { %v92_v30 = vand.u32 31, %v90_v29  ;;  %v402_v33 = vshrl.u32 %v90_v29, 5 }
  0x9f   :  { %v400_v31 = vsub.s32 32, %v92_v30  ;;  %v104_v35 = vshll.u32 %v357_v34, %v92_v30  ;;  %v107_v37 = vshll.u32 %v358_v36, %v92_v30  ;;  %v95_v42 = vshll.u32 %v360_v41, %v92_v30 }
  0xa0   :  { %v98_v45 = vshll.u32 %v361_v43, %v92_v30  ;;  %v101_v48 = vshll.u32 %v362_v46, %v92_v30  ;;  %vm113_vm1 = vcmp.lt.s32.totalorder %v402_v33, 4  ;;  %vm110_vm2 = vcmp.lt.s32.totalorder %v402_v33, 1 }
  0xa1   :  { %v105_v38 = vshrl.u32 %v358_v36, %v400_v31  ;;  %v108_v40 = vshrl.u32 %v359_v39, %v400_v31  ;;  %v96_v44 = vshrl.u32 %v361_v43, %v400_v31  ;;  %v99_v47 = vshrl.u32 %v362_v46, %v400_v31 }
  0xa2   :  { %v102_v49 = vshrl.u32 %v357_v34, %v400_v31  ;;  %vm112_vm3 = vcmp.lt.s32.totalorder %v402_v33, 3  ;;  %vm111_vm4 = vcmp.lt.s32.totalorder %v402_v33, 2  ;;  %v94_v27 = vshrl.u32 %v360_v41, %v400_v31 }
  0xa3   :  { %v106_v50 = vor.u32 %v105_v38, %v104_v35  ;;  %v109_v51 = vor.u32 %v108_v40, %v107_v37  ;;  %v97_v52 = vor.u32 %v96_v44, %v95_v42  ;;  %v100_v54 = vor.u32 %v99_v47, %v98_v45 }
  0xa4   :  { %v103_v55 = vor.u32 %v102_v49, %v101_v48 }
  0xa5   :  { %v119_v56 = vsel %vm113_vm1, %v106_v50, 920167782  ;;  %v123_v57 = vsel %vm113_vm1, %v109_v51, 1326507024  ;;  %v118_v58 = vsel %vm110_vm2, %v97_v52, %v100_v54  ;;  %v114_v35 = vsel %vm110_vm2, %v94_v27, %v97_v52 }
  0xa6   :  { %v120_v59 = vsel %vm112_vm3, %v103_v55, %v119_v56  ;;  %v122_v60 = vsel %vm110_vm2, %v100_v54, %v103_v55  ;;  %v124_v62 = vsel %vm112_vm3, %v106_v50, %v123_v57  ;;  %v115_v23 = vsel %vm113_vm1, %v103_v55, 2102212464 }
  0xa7   :  { %v121_v61 = vsel %vm111_vm4, %v118_v58, %v120_v59  ;;  %v125_v1 = vsel %vm111_vm4, %v122_v60, %v124_v62  ;;  %v116_v36 = vsel %vm112_vm3, %v100_v54, %v115_v23  ;;  %vm221_vm1 = vweird.f32 %v394_v22 }
  0xa8   :  { %v151_v3 = vand.u32 65535, %v121_v61  ;;  %v152_v4 = vshrl.u32 %v121_v61, 16  ;;  %v129_v5 = vand.u32 65535, %v125_v1  ;;  %v130_v6 = vshrl.u32 %v125_v1, 16 }
  0xa9   :  { %v117_v41 = vsel %vm111_vm4, %v114_v35, %v116_v36 }
  0xaa   :  { %v154_v7 = vmul.u32 %v152_v4, %v127_v63  ;;  %v155_v8 = vmul.u32 %v151_v3, %v128_v2  ;;  %v132_v9 = vmul.u32 %v130_v6, %v127_v63  ;;  %v133_v10 = vmul.u32 %v129_v5, %v128_v2 }
  0xab   :  { %v153_v11 = vmul.u32 %v151_v3, %v127_v63  ;;  %v131_v13 = vmul.u32 %v129_v5, %v127_v63  ;;  %v156_v15 = vmul.u32 %v152_v4, %v128_v2  ;;  %v134_v16 = vmul.u32 %v130_v6, %v128_v2 }
  0xac   :  { %v157_v12 = vshll.u32 %v154_v7, 16  ;;  %v135_v14 = vshll.u32 %v132_v9, 16  ;;  %v159_v17 = vshll.u32 %v155_v8, 16  ;;  %v137_v19 = vshll.u32 %v133_v10, 16 }
  0xad   :  { %v158_v32 = vshrl.u32 %v154_v7, 16  ;;  %v136_v37 = vshrl.u32 %v132_v9, 16  ;;  %v160_v39 = vshrl.u32 %v155_v8, 16  ;;  %v138_v42 = vshrl.u32 %v133_v10, 16 }
  0xae   :  { %vm161_vm5 = vc.u32 %v153_v11, %v157_v12  ;;  %v163_v18 = vadd.s32 %v157_v12, %v153_v11  ;;  %vm139_vm6 = vc.u32 %v131_v13, %v135_v14  ;;  %v141_v20 = vadd.s32 %v135_v14, %v131_v13 }
  0xaf   :  { %v162_v21 = vsel %vm161_vm5, 1, %v353_v0  ;;  %v140_v24 = vsel %vm139_vm6, 1, %v353_v0  ;;  %v171_v46 = vmul.u32 %v409_v53, %v117_v41 }
  0xb0   :  { %v164_v25 = vadd.s32 %v162_v21, %v156_v15  ;;  %vm165_vm7 = vc.u32 %v163_v18, %v159_v17  ;;  %v142_v28 = vadd.s32 %v140_v24, %v134_v16  ;;  %vm143_vm8 = vc.u32 %v141_v20, %v137_v19 }
  0xb1   :  { %v166_v29 = vsel %vm165_vm7, 1, %v353_v0  ;;  %v144_v30 = vsel %vm143_vm8, 1, %v353_v0  ;;  %v167_v0 = vadd.s32 %v163_v18, %v159_v17 }
  0xb2   :  { %v168_v34 = vadd.s32 %v166_v29, %v164_v25  ;;  %v146_v38 = vadd.s32 %v144_v30, %v142_v28 }
  0xb4   :  { %v169_v40 = vadd.s32 %v168_v34, %v158_v32  ;;  %v147_v31 = vadd.s32 %v146_v38, %v136_v37 }
  0xb6   :  { %v170_v43 = vadd.s32 %v169_v40, %v160_v39  ;;  %v148_v44 = vadd.s32 %v147_v31, %v138_v42 }
  0xb8   :  { %v174_v45 = vadd.s32 1, %v170_v43  ;;  %vm173_vm9 = vc.u32 %v148_v44, %v167_v0  ;;  %v172_v58 = vadd.s32 %v167_v0, %v148_v44 }
  0xba   :  { %v175_v47 = vsel %vm173_vm9, %v174_v45, %v170_v43 }
  0xbb   :  { %v176_v48 = vadd.s32 %v175_v47, %v171_v46 }
  0xbd   :  { %v177_v49 = vadd.s32 536870912, %v176_v48 }
  0xbf   :  { %v178_v50 = vshrl.u32 %v177_v49, 30 }
  0xc1   :  { %v179_v51 = vshll.u32 %v178_v50, 30  ;;  %v202_v13 = vsub.s32 4, %v178_v50 }
  0xc3   :  { %v180_v52 = vsub.s32 %v176_v48, %v179_v51  ;;  %v203_v18 = vsel %vm80_vm12, %v202_v13, %v178_v50 }
  0xc4   :  { %v205_v26 = vsel %vm450_vm13, 0, %v203_v18 }
  0xc5   :  { %vm181_vm10 = vcmp.lt.s32.totalorder %v180_v52, 0  ;;  %v182_v54 = vsub.s32 0, %v180_v52  ;;  %v222_v27 = vand.u32 3, %v205_v26 }
  0xc7   :  { %v183_v55 = vsel %vm181_vm10, %v182_v54, %v180_v52  ;;  %vm224_vm14 = vcmp.eq.s32.totalorder %v222_v27, 0  ;;  %vm227_vm15 = vcmp.eq.s32.totalorder %v222_v27, 2  ;;  %vm223_vm0 = vcmp.lt.s32.totalorder %v222_v27, 2 }
  0xc8   :  { %v184_v56 = vclz %v183_v55 }
  0xca   :  { %v252_v57 = vadd.s32 4294967294, %v184_v56 }
  0xcc   :  { %vm253_vm11 = vcmp.lt.s32.totalorder %v252_v57, 0 }
  0xcd   :  { %v187_v33 = vsel %vm253_vm11, 0, %v252_v57 }
  0xce   :  { %v188_v59 = vsub.s32 32, %v187_v33  ;;  %v192_v60 = vsub.s32 4294967266, %v187_v33  ;;  %v189_v61 = vshll.u32 %v180_v52, %v187_v33 }
  0xd0   :  { %v190_v62 = vshrl.u32 %v172_v58, %v188_v59  ;;  %v193_v53 = vadd.s32 127, %v192_v60 }
  0xd2   :  { %v191_v63 = vor.u32 %v190_v62, %v189_v61  ;;  %v194_v1 = vshll.u32 %v193_v53, 23 }
  0xd4   :  { %v195_v2 = vor.u32 4788187, %v194_v1  ;;  %v198_v4 = vcvt.s32.f32 %v191_v63 }
  0xd6   :  { %v196_v3 = vand.u32 2147483647, %v195_v2 }
  0xd8   :  { %v199_v5 = vmul.f32 %v198_v4, %v196_v3 }
  0xda   :  { %v200_v6 = vxor.u32 2147483648, %v199_v5 }
  0xdc   :  { %v201_v8 = vsel %vm80_vm12, %v200_v6, %v199_v5 }
  0xdd   :  { %v204_v9 = vsel %vm450_vm13, %v394_v22, %v201_v8 }
  0xde   :  { %v206_v10 = vmul.f32 %v204_v9, %v204_v9 }
  0xe0   :  { %v207_v11 = vmul.f32 -0.001358992, %v206_v10  ;;  %v214_v12 = vmul.f32 -0.00019511016, %v206_v10 }
  0xe2   :  { %v208_v14 = vadd.f32 0.041655596, %v207_v11  ;;  %v215_v15 = vadd.f32 0.008332121, %v214_v12 }
  0xe4   :  { %v209_v16 = vmul.f32 %v208_v14, %v206_v10  ;;  %v216_v17 = vmul.f32 %v215_v15, %v206_v10 }
  0xe6   :  { %v210_v19 = vadd.f32 -0.4999988, %v209_v16  ;;  %v217_v20 = vadd.f32 -0.16666654, %v216_v17 }
  0xe8   :  { %v211_v21 = vmul.f32 %v210_v19, %v206_v10  ;;  %v218_v23 = vmul.f32 %v217_v20, %v206_v10 }
  0xea   :  { %v212_v24 = vadd.f32 1.0, %v211_v21  ;;  %v219_v25 = vadd.f32 1.0, %v218_v23 }
  0xec   :  { %v220_v28 = vmul.f32 %v219_v25, %v204_v9  ;;  %v228_v29 = vxor.u32 2147483648, %v212_v24 }
  0xee   :  { %v225_v30 = vxor.u32 2147483648, %v220_v28  ;;  %v229_v34 = vsel %vm227_vm15, %v228_v29, %v220_v28 }
  0xf0   :  { %v226_v32 = vsel %vm224_vm14, %v212_v24, %v225_v30 }
  0xf1   :  { %v230_v35 = vsel %vm223_vm0, %v226_v32, %v229_v34 }
  0xf2   :  { %v231_v36 = vsel %vm221_vm1, nan, %v230_v35 }
  0xf3   :  { %232 = vst [vmem:[#allocation7] sm:$0x3] %v231_v36 }
  0xf4   :  { %243 = dma.vmem_to_hbm [thread:$0]  %s239_s22, 32, %s241_s25, [#allocation4]  }
  0xf5   :  { %349 = dma.done.wait [#allocation4], 32  }
  0xf6   :  { %350 = vsyncadd [#allocation4], 4294967264 }
  0xf7   :  { %248 = vsyncpa [#allocation3], 1 }
  0xf8   :  { %249 = vsyncpa [#allocation6], 1 }
  0xf9   :  { %250 = vsyncpa [#allocation4], 1 }

</bundles_post_ra>
